<compile_context>
chip_gen: v5e
topology: v5e:2x2
jax: 0.10.0
libtpu: 0.0.40
codegen_flags: <defaults>
</compile_context>

<pallas_src>
import functools

import jax
import jax.numpy as jnp
from jax import lax
from jax.experimental import pallas as pl
from jax.experimental.pallas import tpu as pltpu


def _round_down(x, m):
    return (x // m) * m


def _round_up(x, m):
    return ((x + m - 1) // m) * m


def _sdr_partials_kernel(ref_ref, est_ref, num_out, diff_out,
                         num_acc, diff_acc, *,
                         m_total, tile_n, acc_w,
                         n_tiles_per_group, first_mask_tile, needs_mask):
    g = pl.program_id(0)
    k = pl.program_id(1)

    @pl.when(k == 0)
    def _():
        num_acc[...] = jnp.zeros_like(num_acc)
        diff_acc[...] = jnp.zeros_like(diff_acc)

    r = ref_ref[...].astype(jnp.float32)
    e = est_ref[...].astype(jnp.float32)
    d = e - r
    rr = r * r
    dd = d * d

    n_chunks = tile_n // acc_w

    def lane_fold(x):
        # (R, tile_n) -> (R, acc_w) via static, lane-aligned 512-wide slices:
        # pure VALU adds, no cross-lane data movement, no reshape.
        acc = x[:, 0:acc_w]
        for i in range(1, n_chunks):
            acc = acc + x[:, i * acc_w:(i + 1) * acc_w]
        return acc

    if needs_mask:
        # Global (unclamped) tile index; tiles >= first_mask_tile are the
        # ragged tail tile and/or phantom tiles padding the 2-group grid.
        t = g * n_tiles_per_group + k
        is_full = t < first_mask_tile

        @pl.when(is_full)
        def _():
            # Steady-state path: no masking overhead.
            num_acc[...] += lane_fold(rr)
            diff_acc[...] += lane_fold(dd)

        @pl.when(jnp.logical_not(is_full))
        def _():
            lane = lax.broadcasted_iota(jnp.int32, rr.shape, 1)
            keep = lane < (m_total - t * tile_n)
            num_acc[...] += lane_fold(jnp.where(keep, rr, 0.0))
            diff_acc[...] += lane_fold(jnp.where(keep, dd, 0.0))
    else:
        num_acc[...] += lane_fold(rr)
        diff_acc[...] += lane_fold(dd)

    @pl.when(k == pl.num_programs(1) - 1)
    def _():
        num_out[...] = jnp.sum(num_acc[...], axis=-1, keepdims=True)
        diff_out[...] = jnp.sum(diff_acc[...], axis=-1, keepdims=True)


def sdr(estimates, references, *, target_block_bytes=2 << 20):
    """Pallas implementation of SDR.forward. Returns shape (B,) array."""
    out_dtype = references.dtype
    if estimates.dtype != references.dtype:
        estimates = estimates.astype(references.dtype)

    length = min(references.shape[-1], estimates.shape[-1])
    B = references.shape[0]
    ref2 = references[..., :length].reshape(B, -1)
    est2 = estimates[..., :length].reshape(B, -1)
    N = ref2.shape[1]
    assert est2.shape == (B, N)

    itemsize = jnp.dtype(ref2.dtype).itemsize
    # Sublane fold target is dtype-aware: f32 vregs hold 8 rows, bf16 16, int8 32.
    row_target = 8 * max(1, 4 // itemsize)

    fold = 1
    if B % row_target != 0:
        s = row_target
        while s >= 2:
            if N % s == 0 and (B * s) % row_target == 0:
                fold = s
                break
            s //= 2
    R = B * fold
    M = N // fold
    ref2 = ref2.reshape(R, M)
    est2 = est2.reshape(R, M)

    # Sublane-padded row count (VMEM blocks pad rows to the sublane tile);
    # used for sizing decisions only.
    R_pad = _round_up(R, row_target)

    # Lane-tile width: one input block ~= target_block_bytes, a multiple of
    # ACC_W so the in-kernel lane fold has uniform chunks, at least 128, and
    # no wider than the (rounded-up) data extent.
    ACC_W = 512
    raw = max(target_block_bytes // max(R_pad * itemsize, 1), 128)
    if raw >= ACC_W:
        tile_n = _round_down(raw, ACC_W)
        tile_n = min(tile_n, _round_up(M, ACC_W))
    else:
        tile_n = max(_round_down(raw, 128), 128)
        tile_n = min(tile_n, max(_round_up(M, 128), 128))
    acc_w = min(ACC_W, tile_n)
    assert tile_n % acc_w == 0 and tile_n % 128 == 0

    n_tiles_total = pl.cdiv(M, tile_n)
    # Column-split the reduction into 2 groups whenever there is enough work:
    # the leading "parallel" axis lets v7x's two TensorCores stream different
    # column halves (harmless serial loop on single-TC v5e/v6e).
    n_groups = 2 if n_tiles_total >= 2 else 1
    n_tiles_per_group = pl.cdiv(n_tiles_total, n_groups)

    ragged = (M % tile_n) != 0
    first_mask_tile = n_tiles_total - 1 if ragged else n_tiles_total
    needs_mask = (n_groups * n_tiles_per_group) > first_mask_tile
    has_phantom = (n_groups * n_tiles_per_group) > n_tiles_total

    def in_index_map(g, k):
        t = g * n_tiles_per_group + k
        if has_phantom:
            # At most one phantom tile (last tile of the last group when the
            # tile count is odd); clamp it onto a valid block, it is fully
            # masked off in the kernel.
            t = jnp.minimum(t, n_tiles_total - 1)
        return (0, t)

    kernel = functools.partial(
        _sdr_partials_kernel,
        m_total=M, tile_n=tile_n, acc_w=acc_w,
        n_tiles_per_group=n_tiles_per_group,
        first_mask_tile=first_mask_tile, needs_mask=needs_mask)

    out_struct = jax.ShapeDtypeStruct((n_groups, R, 1), jnp.float32)
    cost = pl.CostEstimate(
        flops=5 * R * M,
        transcendentals=0,
        bytes_accessed=2 * R * M * itemsize + 2 * n_groups * R * 4,
    )

    # VMEM budget computed from actual buffer sizes: 2 inputs x 2 pipeline
    # buffers + 2 narrow accumulators (+ headroom for outputs / internals).
    in_block_bytes = R_pad * tile_n * itemsize
    acc_bytes = 2 * R_pad * acc_w * 4
    vmem_limit = int(min(max(4 * in_block_bytes + acc_bytes + (4 << 20),
                             16 << 20), 64 << 20))

    num_p, diff_p = pl.pallas_call(
        kernel,
        out_shape=(out_struct, out_struct),
        grid=(n_groups, n_tiles_per_group),
        in_specs=[
            pl.BlockSpec((R, tile_n), in_index_map),
            pl.BlockSpec((R, tile_n), in_index_map),
        ],
        out_specs=(
            pl.BlockSpec((None, R, 1), lambda g, k: (g, 0, 0)),
            pl.BlockSpec((None, R, 1), lambda g, k: (g, 0, 0)),
        ),
        scratch_shapes=[
            pltpu.VMEM((R, acc_w), jnp.float32),
            pltpu.VMEM((R, acc_w), jnp.float32),
        ],
        compiler_params=pltpu.CompilerParams(
            dimension_semantics=("parallel", "arbitrary"),
            vmem_limit_bytes=vmem_limit,
        ),
        cost_estimate=cost,
    )(ref2, est2)

    # Combine per-group/per-row partials back to per-batch scalars (tiny).
    num = jnp.sum(num_p, axis=0).reshape(B, fold).sum(axis=-1)
    diff = jnp.sum(diff_p, axis=0).reshape(B, fold).sum(axis=-1)

    delta = jnp.float32(1e-7)
    # den == ||e - r||^2 == num + <e,e> - 2<e,r>; relu is a no-op since diff >= 0.
    den = jnp.maximum(diff, 0.0) + delta
    out = 10.0 * (jnp.log10(num + delta) - jnp.log10(den))
    return out.astype(out_dtype)


def _sdr_reference(estimates, references):
    """Pure-JAX reference mirroring the PyTorch forward, for validation."""
    if estimates.dtype != references.dtype:
        estimates = estimates.astype(references.dtype)
    length = min(references.shape[-1], estimates.shape[-1])
    r = references[..., :length].reshape(references.shape[0], -1)
    e = estimates[..., :length].reshape(estimates.shape[0], -1)
    delta = 1e-7
    num = jnp.einsum("bi,bi->b", r, r)
    den = num + jnp.einsum("bi,bi->b", e, e) - 2 * jnp.einsum("bi,bi->b", e, r)
    den = jnp.log10(jnp.maximum(den, 0.0) + delta)
    num = jnp.log10(num + delta)
    return 10.0 * (num - den)


if __name__ == "__main__":
    key = jax.random.PRNGKey(0)
    k1, k2 = jax.random.split(key)

    # (B, C, T)-style inputs; the module flattens everything after batch.
    B, C, T = 2, 4, 256  # flattened N = 1024
    references = jax.random.normal(k1, (B, C, T), dtype=jnp.float32)
    # estimates slightly longer than references to exercise the crop-to-min path
    noise = 0.1 * jax.random.normal(k2, (B, C, T + 7), dtype=jnp.float32)
    estimates = noise.at[..., :T].add(references)

    out = jax.block_until_ready(sdr(estimates, references))
    ref_out = jax.block_until_ready(_sdr_reference(estimates, references))

    assert out.shape == (B,)
    # The kernel accumulates den as ||e - r||^2 (better conditioned than the
    # reference's num + ee - 2*cross), so allow a slightly looser fp tolerance.
    assert jnp.allclose(out, ref_out, rtol=1e-3, atol=1e-3), (out, ref_out)

    print("KERNEL_OK")
</pallas_src>

<mosaic_0001>
module attributes {stable_mosaic.version = 11 : i64} {
  func.func @_sdr_partials_kernel(%arg0: i32, %arg1: i32, %arg2: memref<16x512xf32, #tpu.memory_space<vmem>>, %arg3: memref<16x512xf32, #tpu.memory_space<vmem>>, %arg4: memref<1x16x1xf32, #tpu.memory_space<vmem>>, %arg5: memref<1x16x1xf32, #tpu.memory_space<vmem>>, %arg6: memref<16x512xf32, #tpu.memory_space<vmem>>, %arg7: memref<16x512xf32, #tpu.memory_space<vmem>>) attributes {dimension_semantics = [#tpu.dimension_semantics<parallel>, #tpu.dimension_semantics<arbitrary>], iteration_bounds = array<i64: 1, 1>, scalar_prefetch = 0 : i64, scratch_operands = 2 : i64, tpu.core_type = #tpu.core_type<tc>, window_params = [{transform_indices = @transform_0, window_bounds = array<i64: 16, 512>}, {transform_indices = @transform_1, window_bounds = array<i64: 16, 512>}, {transform_indices = @transform_2, window_bounds = array<i64: 1, 16, 1>}, {transform_indices = @transform_3, window_bounds = array<i64: 1, 16, 1>}]} {
    %c0_i32 = arith.constant 0 : i32
    %0 = arith.cmpi eq, %arg1, %c0_i32 : i32
    %1 = arith.extui %0 : i1 to i32
    %c0_i32_0 = arith.constant 0 : i32
    %2 = arith.cmpi ne, %1, %c0_i32_0 : i32
    scf.if %2 {
      %cst = arith.constant 0.000000e+00 : f32
      %19 = vector.broadcast %cst : f32 to vector<16x512xf32>
      %c0_9 = arith.constant 0 : index
      %c0_10 = arith.constant 0 : index
      %20 = vector.load %arg6[%c0_9, %c0_10] : memref<16x512xf32, #tpu.memory_space<vmem>>, vector<16x512xf32>
      tpu.vector_store %arg6[%c0_9, %c0_10], %19 {strides = array<i32>} : memref<16x512xf32, #tpu.memory_space<vmem>>, vector<16x512xf32>,
      %cst_11 = arith.constant 0.000000e+00 : f32
      %21 = vector.broadcast %cst_11 : f32 to vector<16x512xf32>
      %c0_12 = arith.constant 0 : index
      %c0_13 = arith.constant 0 : index
      %22 = vector.load %arg7[%c0_12, %c0_13] : memref<16x512xf32, #tpu.memory_space<vmem>>, vector<16x512xf32>
      tpu.vector_store %arg7[%c0_12, %c0_13], %21 {strides = array<i32>} : memref<16x512xf32, #tpu.memory_space<vmem>>, vector<16x512xf32>,
    } else {
    }
    %c0 = arith.constant 0 : index
    %c0_1 = arith.constant 0 : index
    %3 = vector.load %arg2[%c0, %c0_1] : memref<16x512xf32, #tpu.memory_space<vmem>>, vector<16x512xf32>
    %c0_2 = arith.constant 0 : index
    %c0_3 = arith.constant 0 : index
    %4 = vector.load %arg3[%c0_2, %c0_3] : memref<16x512xf32, #tpu.memory_space<vmem>>, vector<16x512xf32>
    %5 = arith.subf %4, %3 : vector<16x512xf32>
    %6 = arith.mulf %3, %3 : vector<16x512xf32>
    %7 = arith.mulf %5, %5 : vector<16x512xf32>
    %c1_i32 = arith.constant 1 : i32
    %8 = arith.muli %arg0, %c1_i32 : i32
    %9 = arith.addi %8, %arg1 : i32
    %c0_i32_4 = arith.constant 0 : i32
    %10 = arith.cmpi slt, %9, %c0_i32_4 : i32
    %11 = arith.extui %10 : i1 to i32
    %c0_i32_5 = arith.constant 0 : i32
    %12 = arith.cmpi ne, %11, %c0_i32_5 : i32
    scf.if %12 {
      %c0_9 = arith.constant 0 : index
      %c0_10 = arith.constant 0 : index
      %19 = vector.load %arg6[%c0_9, %c0_10] : memref<16x512xf32, #tpu.memory_space<vmem>>, vector<16x512xf32>
      %20 = arith.addf %19, %6 : vector<16x512xf32>
      %c0_11 = arith.constant 0 : index
      %c0_12 = arith.constant 0 : index
      %21 = vector.load %arg6[%c0_11, %c0_12] : memref<16x512xf32, #tpu.memory_space<vmem>>, vector<16x512xf32>
      tpu.vector_store %arg6[%c0_11, %c0_12], %20 {strides = array<i32>} : memref<16x512xf32, #tpu.memory_space<vmem>>, vector<16x512xf32>,
      %c0_13 = arith.constant 0 : index
      %c0_14 = arith.constant 0 : index
      %22 = vector.load %arg7[%c0_13, %c0_14] : memref<16x512xf32, #tpu.memory_space<vmem>>, vector<16x512xf32>
      %23 = arith.addf %22, %7 : vector<16x512xf32>
      %c0_15 = arith.constant 0 : index
      %c0_16 = arith.constant 0 : index
      %24 = vector.load %arg7[%c0_15, %c0_16] : memref<16x512xf32, #tpu.memory_space<vmem>>, vector<16x512xf32>
      tpu.vector_store %arg7[%c0_15, %c0_16], %23 {strides = array<i32>} : memref<16x512xf32, #tpu.memory_space<vmem>>, vector<16x512xf32>,
    } else {
    }
    %true = arith.constant true
    %13 = arith.xori %10, %true : i1
    %14 = arith.extui %13 : i1 to i32
    %c0_i32_6 = arith.constant 0 : i32
    %15 = arith.cmpi ne, %14, %c0_i32_6 : i32
    scf.if %15 {
      %19 = tpu.iota {dimensions = array<i32: 1>} : vector<16x512xi32>
      %c512_i32 = arith.constant 512 : i32
      %20 = arith.muli %9, %c512_i32 : i32
      %c128_i32 = arith.constant 128 : i32
      %21 = arith.subi %c128_i32, %20 : i32
      %22 = vector.broadcast %21 : i32 to vector<16x512xi32>
      %23 = arith.cmpi slt, %19, %22 : vector<16x512xi32>
      %c0_9 = arith.constant 0 : index
      %c0_10 = arith.constant 0 : index
      %24 = vector.load %arg6[%c0_9, %c0_10] : memref<16x512xf32, #tpu.memory_space<vmem>>, vector<16x512xf32>
      %cst = arith.constant 0.000000e+00 : f32
      %25 = vector.broadcast %cst : f32 to vector<16x512xf32>
      %26 = arith.select %23, %6, %25 : vector<16x512xi1>, vector<16x512xf32>
      %27 = arith.addf %24, %26 : vector<16x512xf32>
      %c0_11 = arith.constant 0 : index
      %c0_12 = arith.constant 0 : index
      %28 = vector.load %arg6[%c0_11, %c0_12] : memref<16x512xf32, #tpu.memory_space<vmem>>, vector<16x512xf32>
      tpu.vector_store %arg6[%c0_11, %c0_12], %27 {strides = array<i32>} : memref<16x512xf32, #tpu.memory_space<vmem>>, vector<16x512xf32>,
      %c0_13 = arith.constant 0 : index
      %c0_14 = arith.constant 0 : index
      %29 = vector.load %arg7[%c0_13, %c0_14] : memref<16x512xf32, #tpu.memory_space<vmem>>, vector<16x512xf32>
      %cst_15 = arith.constant 0.000000e+00 : f32
      %30 = vector.broadcast %cst_15 : f32 to vector<16x512xf32>
      %31 = arith.select %23, %7, %30 : vector<16x512xi1>, vector<16x512xf32>
      %32 = arith.addf %29, %31 : vector<16x512xf32>
      %c0_16 = arith.constant 0 : index
      %c0_17 = arith.constant 0 : index
      %33 = vector.load %arg7[%c0_16, %c0_17] : memref<16x512xf32, #tpu.memory_space<vmem>>, vector<16x512xf32>
      tpu.vector_store %arg7[%c0_16, %c0_17], %32 {strides = array<i32>} : memref<16x512xf32, #tpu.memory_space<vmem>>, vector<16x512xf32>,
    } else {
    }
    %c0_i32_7 = arith.constant 0 : i32
    %16 = arith.cmpi eq, %arg1, %c0_i32_7 : i32
    %17 = arith.extui %16 : i1 to i32
    %c0_i32_8 = arith.constant 0 : i32
    %18 = arith.cmpi ne, %17, %c0_i32_8 : i32
    scf.if %18 {
      %c0_9 = arith.constant 0 : index
      %c0_10 = arith.constant 0 : index
      %19 = vector.load %arg6[%c0_9, %c0_10] : memref<16x512xf32, #tpu.memory_space<vmem>>, vector<16x512xf32>
      %cst = arith.constant dense<0.000000e+00> : vector<16xf32>
      %20 = vector.multi_reduction <add>, %19, %cst [1] : vector<16x512xf32> to vector<16xf32>
      %21 = vector.shape_cast %20 : vector<16xf32> to vector<16x1xf32>
      %c0_11 = arith.constant 0 : index
      %c0_12 = arith.constant 0 : index
      %c0_13 = arith.constant 0 : index
      %22 = vector.load %arg4[%c0_11, %c0_12, %c0_13] : memref<1x16x1xf32, #tpu.memory_space<vmem>>, vector<1x16x1xf32>
      %23 = vector.shape_cast %22 : vector<1x16x1xf32> to vector<16x1xf32>
      %24 = vector.shape_cast %21 : vector<16x1xf32> to vector<1x16x1xf32>
      tpu.vector_store %arg4[%c0_11, %c0_12, %c0_13], %24 {strides = array<i32>} : memref<1x16x1xf32, #tpu.memory_space<vmem>>, vector<1x16x1xf32>,
      %c0_14 = arith.constant 0 : index
      %c0_15 = arith.constant 0 : index
      %25 = vector.load %arg7[%c0_14, %c0_15] : memref<16x512xf32, #tpu.memory_space<vmem>>, vector<16x512xf32>
      %cst_16 = arith.constant dense<0.000000e+00> : vector<16xf32>
      %26 = vector.multi_reduction <add>, %25, %cst_16 [1] : vector<16x512xf32> to vector<16xf32>
      %27 = vector.shape_cast %26 : vector<16xf32> to vector<16x1xf32>
      %c0_17 = arith.constant 0 : index
      %c0_18 = arith.constant 0 : index
      %c0_19 = arith.constant 0 : index
      %28 = vector.load %arg5[%c0_17, %c0_18, %c0_19] : memref<1x16x1xf32, #tpu.memory_space<vmem>>, vector<1x16x1xf32>
      %29 = vector.shape_cast %28 : vector<1x16x1xf32> to vector<16x1xf32>
      %30 = vector.shape_cast %27 : vector<16x1xf32> to vector<1x16x1xf32>
      tpu.vector_store %arg5[%c0_17, %c0_18, %c0_19], %30 {strides = array<i32>} : memref<1x16x1xf32, #tpu.memory_space<vmem>>, vector<1x16x1xf32>,
    } else {
    }
    return
  }
  func.func @transform_0(%arg0: i32, %arg1: i32) -> (i32, i32) {
    %c1_i32 = arith.constant 1 : i32
    %0 = arith.muli %arg0, %c1_i32 : i32
    %1 = arith.addi %0, %arg1 : i32
    %c0_i32 = arith.constant 0 : i32
    %c0_i32_0 = arith.constant 0 : i32
    return %c0_i32, %1 : i32, i32
  }
  func.func @transform_1(%arg0: i32, %arg1: i32) -> (i32, i32) {
    %c1_i32 = arith.constant 1 : i32
    %0 = arith.muli %arg0, %c1_i32 : i32
    %1 = arith.addi %0, %arg1 : i32
    %c0_i32 = arith.constant 0 : i32
    %c0_i32_0 = arith.constant 0 : i32
    return %c0_i32, %1 : i32, i32
  }
  func.func @transform_2(%arg0: i32, %arg1: i32) -> (i32, i32, i32) {
    %c0_i32 = arith.constant 0 : i32
    %c0_i32_0 = arith.constant 0 : i32
    %c0_i32_1 = arith.constant 0 : i32
    return %arg0, %c0_i32, %c0_i32_0 : i32, i32, i32
  }
  func.func @transform_3(%arg0: i32, %arg1: i32) -> (i32, i32, i32) {
    %c0_i32 = arith.constant 0 : i32
    %c0_i32_0 = arith.constant 0 : i32
    %c0_i32_1 = arith.constant 0 : i32
    return %arg0, %c0_i32, %c0_i32_0 : i32, i32, i32
  }
}

</mosaic_0001>

<bundles_post_ra>
// kernel: tpu_custom_call.1
= control target key start
LH: loop header
LB: loop body
LE: loop exit
PB: predicated region body
PF: predicated region fallthrough
CT: control target
= control target key end

     0   :  { %9 = vsyncpa [#allocation5], 0  ;;  %s420_s0 = inlined_call_operand.hbm [shape: f32[16,128], index: 0, kind: input, shape index: {}]   ;;  %s421_s1 = inlined_call_operand.hbm [shape: f32[16,128], index: 1, kind: input, shape index: {}]   ;;  %s422_s2 = inlined_call_operand.vmem [shape: f32[1,16,1], index: 2, kind: output, shape index: {0}]   ;;  %s423_s3 = inlined_call_operand.vmem [shape: f32[1,16,1], index: 3, kind: output, shape index: {1}]  }
   0x1   :  { %10 = vsyncpa [#allocation7], 0 }
   0x2   :  { %19 = vsyncadd [#allocation5], 768  ;;  %s25_s14 = sshll.u32 %s420_s0, 4  ;;  %s377_s15 = smov [#allocation4]   ;;  %s26_s14 = int_to_ptr.hbm [resolvable:$true] %s25_s14 }
   0x3   :  { %s27_s16 = sshll.u32 %s377_s15, 4  ;;  %s378_s17 = smov 128   ;;  %s28_s16 = int_to_ptr.vmem [resolvable:$true] %s27_s16 }
   0x4   :  { %s379_s18 = smov 512   ;;  %s380_s19 = smov 8  }
   0x5   :  { %33 = dma.hbm_to_vmem [thread:$0]  %s26_s14, 256, %s28_s16, [#allocation5], %s378_s17, %s379_s18, %s380_s19  }
   0x6   :  { %42 = vsyncadd [#allocation7], 768  ;;  %s48_s22 = sshll.u32 %s421_s1, 4  ;;  %s381_s23 = smov [#allocation6]   ;;  %s49_s22 = int_to_ptr.hbm [resolvable:$true] %s48_s22 }
   0x7   :  { %s50_s24 = sshll.u32 %s381_s23, 4  ;;  %s51_s24 = int_to_ptr.vmem [resolvable:$true] %s50_s24 }
   0x8   :  { %56 = dma.hbm_to_vmem [thread:$0]  %s49_s22, 256, %s51_s24, [#allocation7], %s378_s17, %s379_s18, %s380_s19  }
   0x9   :  { %373 = dma.done.wait [#allocation5], 1024  }
   0xa   :  { %374 = vsyncadd [#allocation5], 4294966272 }
   0xb   :  { %375 = dma.done.wait [#allocation7], 1024  }
   0xc   :  { %376 = vsyncadd [#allocation7], 4294966272  ;;  %v93_v0 = vld [vmem:[#allocation4] sm:$0xff]  ;;  %vm287_vm0 = vcmask 7168  }
   0xd   :  { %v101_v1 = vld [vmem:[#allocation6] sm:$0xff]  ;;  %v117_v2 = vmul.f32 %v93_v0, %v93_v0 }
   0xe   :  { %v109_v3 = vsub.f32 %v101_v1, %v93_v0  ;;  %v97_v4 = vld [vmem:[#allocation4 + $0x20] sm:$0xff] }
   0xf   :  { %v105_v5 = vld [vmem:[#allocation6 + $0x20] sm:$0xff]  ;;  %280 = vadd.xlane.f32.xlu0 %v117_v2  ;;  %v121_v8 = vmul.f32 %v97_v4, %v97_v4 }
  0x10   :  { %v125_v6 = vmul.f32 %v109_v3, %v109_v3  ;;  %v113_v7 = vsub.f32 %v105_v5, %v97_v4 }
  0x12   :  { %301 = vadd.xlane.f32.xlu1 %v125_v6  ;;  %v129_v9 = vmul.f32 %v113_v7, %v113_v7 }
  0x17   :  { %285 = vadd.xlane.f32.xlu0 %v121_v8 }
  0x1a   :  { %306 = vadd.xlane.f32.xlu1 %v129_v9 }
  0x82   :  { %v281_v10 = vpop.xlane.xlu0 %280 }
  0x83   :  { %288 = vst.msk [vmem:[%s422_s2] sm:$0xff] %vm287_vm0, %v281_v10 }
  0x85   :  { %v302_v11 = vpop.xlane.xlu1 %301 }
  0x86   :  { %308 = vst.msk [vmem:[%s423_s3] sm:$0xff] %vm287_vm0, %v302_v11 }
  0x8a   :  { %v286_v12 = vpop.xlane.xlu0 %285 }
  0x8b   :  { %289 = vst.msk [vmem:[%s422_s2 + $0x8] sm:$0xff] %vm287_vm0, %v286_v12 }
  0x8d   :  { %v307_v13 = vpop.xlane.xlu1 %306 }
  0x8e   :  { %309 = vst.msk [vmem:[%s423_s3 + $0x8] sm:$0xff] %vm287_vm0, %v307_v13 }
  0x8f   :  { %318 = vsyncpa [#allocation5], 1 }
  0x90   :  { %319 = vsyncpa [#allocation7], 1 }

</bundles_post_ra>
